<compile_context>
chip_gen: v6e
topology: v6e:2x2x1
jax: 0.10.0
libtpu: 0.0.40
codegen_flags: <defaults>
</compile_context>

<pallas_src>
import math
import jax
import jax.numpy as jnp
from jax.experimental import pallas as pl
from jax.experimental.pallas import tpu as pltpu


_GELU_C = math.sqrt(2.0 / math.pi)


def mlp_kernel(x_ref, w1_ref, b1_ref, w2_ref, b2_ref, o_ref, acc_ref):
    j = pl.program_id(1)

    @pl.when(j == 0)
    def _():
        acc_ref[...] = jnp.zeros_like(acc_ref)

    # First linear (H-tile): (tm, Dp) @ (Dp, th) -> f32, bias in f32.
    h = jnp.dot(x_ref[...], w1_ref[...], preferred_element_type=jnp.float32)
    h = h + b1_ref[...]

    # GELU tanh approximation (matches nn.GELU(approximate='tanh')), f32 math.
    g = 0.5 * h * (1.0 + jnp.tanh(_GELU_C * (h + 0.044715 * h * h * h)))

    # Second linear accumulated over H tiles: (tm, th) @ (th, Dp) -> f32 acc.
    acc_ref[...] += jnp.dot(
        g.astype(w2_ref.dtype), w2_ref[...], preferred_element_type=jnp.float32
    )

    @pl.when(j == pl.num_programs(1) - 1)
    def _():
        o_ref[...] = (acc_ref[...] + b2_ref[...]).astype(o_ref.dtype)


def _round_up(x, m):
    return ((x + m - 1) // m) * m


def mlp_pallas(x, w1, b1, w2, b2, *, tm=256, th=512, compute_dtype=jnp.bfloat16):
    """x: (B, T, D). w1: (D, H), b1: (H,), w2: (H, D), b2: (D,) with H = 4*D.

    Weights are stored (in_features, out_features): kernel computes x @ W + b,
    equivalent to PyTorch's x @ W_pt.T + b.
    """
    B, T, D = x.shape
    H = w1.shape[1]
    rows = B * T

    # Lane-dense / sublane-aligned padded sizes and effective tiles.
    D_pad = _round_up(D, 128)
    tm_eff = min(tm, _round_up(rows, 8))          # row tile (multiple of 8)
    rows_pad = _round_up(rows, tm_eff)
    th_eff = min(th, _round_up(H, 128))           # hidden tile (multiple of 128)
    H_pad = _round_up(H, th_eff)

    # Pad + cast MXU operands to bf16; biases stay f32.
    x2d = jnp.pad(x.reshape(rows, D), ((0, rows_pad - rows), (0, D_pad - D)))
    x2d = x2d.astype(compute_dtype)
    w1p = jnp.pad(w1, ((0, D_pad - D), (0, H_pad - H))).astype(compute_dtype)
    w2p = jnp.pad(w2, ((0, H_pad - H), (0, D_pad - D))).astype(compute_dtype)
    b1p = jnp.pad(b1, (0, H_pad - H)).reshape(1, H_pad).astype(jnp.float32)
    b2p = jnp.pad(b2, (0, D_pad - D)).reshape(1, D_pad).astype(jnp.float32)

    grid = (rows_pad // tm_eff, H_pad // th_eff)

    # VMEM budget: double-buffered blocks + f32 accumulator (+50% margin).
    cbytes = jnp.dtype(compute_dtype).itemsize
    obytes = jnp.dtype(x.dtype).itemsize
    block_bytes = (
        2 * tm_eff * D_pad * cbytes        # x tile (double-buffered)
        + 2 * D_pad * th_eff * cbytes      # w1 tile
        + 2 * th_eff * D_pad * cbytes      # w2 tile
        + 2 * tm_eff * D_pad * obytes      # output tile
        + tm_eff * D_pad * 4               # f32 accumulator scratch
        + 2 * (th_eff + D_pad) * 4         # biases
    )
    vmem_limit = int(min(max(block_bytes * 3 // 2, 32 * 1024 * 1024),
                         64 * 1024 * 1024))

    cost = pl.CostEstimate(
        flops=4 * rows * D * H,                       # two matmuls
        transcendentals=rows * H,                     # tanh
        bytes_accessed=(rows * D * (cbytes + obytes)
                        + (D * H + H * D) * cbytes
                        + (H + D) * 4),
    )

    out = pl.pallas_call(
        mlp_kernel,
        out_shape=jax.ShapeDtypeStruct((rows_pad, D_pad), x.dtype),
        grid_spec=pltpu.PrefetchScalarGridSpec(
            num_scalar_prefetch=0,
            grid=grid,
            in_specs=[
                pl.BlockSpec((tm_eff, D_pad), lambda i, j: (i, 0)),   # x rows tile
                pl.BlockSpec((D_pad, th_eff), lambda i, j: (0, j)),   # w1 H-tile
                pl.BlockSpec((1, th_eff), lambda i, j: (0, j)),       # b1 H-tile
                pl.BlockSpec((th_eff, D_pad), lambda i, j: (j, 0)),   # w2 H-tile
                pl.BlockSpec((1, D_pad), lambda i, j: (0, 0)),        # b2
            ],
            out_specs=pl.BlockSpec((tm_eff, D_pad), lambda i, j: (i, 0)),
            scratch_shapes=[pltpu.VMEM((tm_eff, D_pad), jnp.float32)],
        ),
        compiler_params=pltpu.CompilerParams(
            dimension_semantics=("parallel", "arbitrary"),
            vmem_limit_bytes=vmem_limit,
        ),
        cost_estimate=cost,
    )(x2d, w1p, b1p, w2p, b2p)

    return out[:rows, :D].reshape(B, T, D)


def mlp_reference(x, w1, b1, w2, b2):
    h = x @ w1 + b1
    g = 0.5 * h * (1.0 + jnp.tanh(_GELU_C * (h + 0.044715 * h ** 3)))
    return g @ w2 + b2


if __name__ == "__main__":
    # Small deterministic config: batch=2, seq=8, n_embd=32 (hidden = 4*32 = 128).
    B, T, D = 2, 8, 32
    H = 4 * D

    key = jax.random.PRNGKey(0)
    kx, k1, k2 = jax.random.split(key, 3)

    x = jax.random.normal(kx, (B, T, D), dtype=jnp.float32)
    # Deterministic GPT-2-style init, stored as (in_features, out_features).
    w1 = jax.random.normal(k1, (D, H), dtype=jnp.float32) * 0.02
    b1 = jnp.zeros((H,), dtype=jnp.float32)
    w2 = jax.random.normal(k2, (H, D), dtype=jnp.float32) * 0.02
    b2 = jnp.zeros((D,), dtype=jnp.float32)

    out = mlp_pallas(x, w1, b1, w2, b2)
    out = jax.block_until_ready(out)

    ref = mlp_reference(x, w1, b1, w2, b2)
    assert out.shape == (B, T, D)
    # Tolerance relaxed vs the pure-f32 path: MXU inputs are bf16 (f32 accumulate).
    assert jnp.allclose(out, ref, atol=2e-3, rtol=2e-2), "mismatch vs reference"

    print("KERNEL_OK")
</pallas_src>

<mosaic_0001>
module attributes {stable_mosaic.version = 11 : i64} {
  func.func @mlp_kernel(%arg0: i32, %arg1: i32, %arg2: memref<16x128xbf16, #tpu.memory_space<vmem>>, %arg3: memref<128x128xbf16, #tpu.memory_space<vmem>>, %arg4: memref<1x128xf32, #tpu.memory_space<vmem>>, %arg5: memref<128x128xbf16, #tpu.memory_space<vmem>>, %arg6: memref<1x128xf32, #tpu.memory_space<vmem>>, %arg7: memref<16x128xf32, #tpu.memory_space<vmem>>, %arg8: memref<16x128xf32, #tpu.memory_space<vmem>>) attributes {dimension_semantics = [#tpu.dimension_semantics<parallel>, #tpu.dimension_semantics<arbitrary>], iteration_bounds = array<i64: 1, 1>, scalar_prefetch = 0 : i64, scratch_operands = 1 : i64, tpu.core_type = #tpu.core_type<tc>, window_params = [{transform_indices = @transform_0, window_bounds = array<i64: 16, 128>}, {transform_indices = @transform_1, window_bounds = array<i64: 128, 128>}, {transform_indices = @transform_2, window_bounds = array<i64: 1, 128>}, {transform_indices = @transform_3, window_bounds = array<i64: 128, 128>}, {pipeline_mode = #tpu.pipeline_mode<synchronous>, transform_indices = @transform_4, window_bounds = array<i64: 1, 128>}, {transform_indices = @transform_5, window_bounds = array<i64: 16, 128>}]} {
    %c0_i32 = arith.constant 0 : i32
    %0 = arith.cmpi eq, %arg1, %c0_i32 : i32
    %1 = arith.extui %0 : i1 to i32
    %c0_i32_0 = arith.constant 0 : i32
    %2 = arith.cmpi ne, %1, %c0_i32_0 : i32
    scf.if %2 {
      %cst_19 = arith.constant 0.000000e+00 : f32
      %31 = vector.broadcast %cst_19 : f32 to vector<16x128xf32>
      %c0_20 = arith.constant 0 : index
      %c0_21 = arith.constant 0 : index
      %32 = vector.load %arg8[%c0_20, %c0_21] : memref<16x128xf32, #tpu.memory_space<vmem>>, vector<16x128xf32>
      tpu.vector_store %arg8[%c0_20, %c0_21], %31 {strides = array<i32>} : memref<16x128xf32, #tpu.memory_space<vmem>>, vector<16x128xf32>,
    } else {
    }
    %c0 = arith.constant 0 : index
    %c0_1 = arith.constant 0 : index
    %3 = vector.load %arg2[%c0, %c0_1] : memref<16x128xbf16, #tpu.memory_space<vmem>>, vector<16x128xbf16>
    %c0_2 = arith.constant 0 : index
    %c0_3 = arith.constant 0 : index
    %4 = vector.load %arg3[%c0_2, %c0_3] : memref<128x128xbf16, #tpu.memory_space<vmem>>, vector<128x128xbf16>
    %cst = arith.constant dense<0.000000e+00> : vector<16x128xf32>
    %5 = tpu.matmul %3, %4, %cst {dimension_numbers = #tpu.dot_dimension_numbers<[1], [0], [0], [1], [0, 0, 1, 1], [], []>} : vector<16x128xbf16>, vector<128x128xbf16>, vector<16x128xf32> -> vector<16x128xf32>
    %c0_4 = arith.constant 0 : index
    %c0_5 = arith.constant 0 : index
    %6 = vector.load %arg4[%c0_4, %c0_5] : memref<1x128xf32, #tpu.memory_space<vmem>>, vector<1x128xf32>
    %7 = vector.broadcast %6 : vector<1x128xf32> to vector<16x128xf32>
    %8 = arith.addf %5, %7 : vector<16x128xf32>
    %cst_6 = arith.constant 5.000000e-01 : f32
    %9 = vector.broadcast %cst_6 : f32 to vector<16x128xf32>
    %10 = arith.mulf %9, %8 : vector<16x128xf32>
    %cst_7 = arith.constant 4.471500e-02 : f32
    %11 = vector.broadcast %cst_7 : f32 to vector<16x128xf32>
    %12 = arith.mulf %11, %8 : vector<16x128xf32>
    %13 = arith.mulf %12, %8 : vector<16x128xf32>
    %14 = arith.mulf %13, %8 : vector<16x128xf32>
    %15 = arith.addf %8, %14 : vector<16x128xf32>
    %cst_8 = arith.constant 0.797884583 : f32
    %16 = vector.broadcast %cst_8 : f32 to vector<16x128xf32>
    %17 = arith.mulf %16, %15 : vector<16x128xf32>
    %18 = math.tanh %17 : vector<16x128xf32>
    %cst_9 = arith.constant 1.000000e+00 : f32
    %19 = vector.broadcast %cst_9 : f32 to vector<16x128xf32>
    %20 = arith.addf %19, %18 : vector<16x128xf32>
    %21 = arith.mulf %10, %20 : vector<16x128xf32>
    %c0_10 = arith.constant 0 : index
    %c0_11 = arith.constant 0 : index
    %22 = vector.load %arg8[%c0_10, %c0_11] : memref<16x128xf32, #tpu.memory_space<vmem>>, vector<16x128xf32>
    %23 = arith.truncf %21 : vector<16x128xf32> to vector<16x128xbf16>
    %c0_12 = arith.constant 0 : index
    %c0_13 = arith.constant 0 : index
    %24 = vector.load %arg5[%c0_12, %c0_13] : memref<128x128xbf16, #tpu.memory_space<vmem>>, vector<128x128xbf16>
    %cst_14 = arith.constant dense<0.000000e+00> : vector<16x128xf32>
    %25 = tpu.matmul %23, %24, %cst_14 {dimension_numbers = #tpu.dot_dimension_numbers<[1], [0], [0], [1], [0, 0, 1, 1], [], []>} : vector<16x128xbf16>, vector<128x128xbf16>, vector<16x128xf32> -> vector<16x128xf32>
    %26 = arith.addf %22, %25 : vector<16x128xf32>
    %c0_15 = arith.constant 0 : index
    %c0_16 = arith.constant 0 : index
    %27 = vector.load %arg8[%c0_15, %c0_16] : memref<16x128xf32, #tpu.memory_space<vmem>>, vector<16x128xf32>
    tpu.vector_store %arg8[%c0_15, %c0_16], %26 {strides = array<i32>} : memref<16x128xf32, #tpu.memory_space<vmem>>, vector<16x128xf32>,
    %c0_i32_17 = arith.constant 0 : i32
    %28 = arith.cmpi eq, %arg1, %c0_i32_17 : i32
    %29 = arith.extui %28 : i1 to i32
    %c0_i32_18 = arith.constant 0 : i32
    %30 = arith.cmpi ne, %29, %c0_i32_18 : i32
    scf.if %30 {
      %c0_19 = arith.constant 0 : index
      %c0_20 = arith.constant 0 : index
      %31 = vector.load %arg8[%c0_19, %c0_20] : memref<16x128xf32, #tpu.memory_space<vmem>>, vector<16x128xf32>
      %c0_21 = arith.constant 0 : index
      %c0_22 = arith.constant 0 : index
      %32 = vector.load %arg6[%c0_21, %c0_22] : memref<1x128xf32, #tpu.memory_space<vmem>>, vector<1x128xf32>
      %33 = vector.broadcast %32 : vector<1x128xf32> to vector<16x128xf32>
      %34 = arith.addf %31, %33 : vector<16x128xf32>
      %c0_23 = arith.constant 0 : index
      %c0_24 = arith.constant 0 : index
      %35 = vector.load %arg7[%c0_23, %c0_24] : memref<16x128xf32, #tpu.memory_space<vmem>>, vector<16x128xf32>
      tpu.vector_store %arg7[%c0_23, %c0_24], %34 {strides = array<i32>} : memref<16x128xf32, #tpu.memory_space<vmem>>, vector<16x128xf32>,
    } else {
    }
    return
  }
  func.func @transform_0(%arg0: i32, %arg1: i32) -> (i32, i32) {
    %c0_i32 = arith.constant 0 : i32
    %c0_i32_0 = arith.constant 0 : i32
    return %arg0, %c0_i32 : i32, i32
  }
  func.func @transform_1(%arg0: i32, %arg1: i32) -> (i32, i32) {
    %c0_i32 = arith.constant 0 : i32
    %c0_i32_0 = arith.constant 0 : i32
    return %c0_i32, %arg1 : i32, i32
  }
  func.func @transform_2(%arg0: i32, %arg1: i32) -> (i32, i32) {
    %c0_i32 = arith.constant 0 : i32
    %c0_i32_0 = arith.constant 0 : i32
    return %c0_i32, %arg1 : i32, i32
  }
  func.func @transform_3(%arg0: i32, %arg1: i32) -> (i32, i32) {
    %c0_i32 = arith.constant 0 : i32
    %c0_i32_0 = arith.constant 0 : i32
    return %arg1, %c0_i32 : i32, i32
  }
  func.func @transform_4(%arg0: i32, %arg1: i32) -> (i32, i32) {
    %c0_i32 = arith.constant 0 : i32
    %c0_i32_0 = arith.constant 0 : i32
    %c0_i32_1 = arith.constant 0 : i32
    return %c0_i32, %c0_i32_0 : i32, i32
  }
  func.func @transform_5(%arg0: i32, %arg1: i32) -> (i32, i32) {
    %c0_i32 = arith.constant 0 : i32
    %c0_i32_0 = arith.constant 0 : i32
    return %arg0, %c0_i32 : i32, i32
  }
}

</mosaic_0001>

<bundles_post_ra>
// kernel: tpu_custom_call.1
= control target key start
LH: loop header
LB: loop body
LE: loop exit
PB: predicated region body
PF: predicated region fallthrough
CT: control target
= control target key end

     0   :  { %10 = vsyncpa [#allocation4], 0  ;;  %s605_s0 = inlined_call_operand.hbm [shape: bf16[16,128], index: 0, kind: input, shape index: {}]   ;;  %s606_s1 = inlined_call_operand.hbm [shape: bf16[128,128], index: 1, kind: input, shape index: {}]   ;;  %s607_s2 = inlined_call_operand.vmem [shape: f32[1,128], index: 2, kind: input, shape index: {}]   ;;  %s608_s3 = inlined_call_operand.hbm [shape: bf16[128,128], index: 3, kind: input, shape index: {}]   ;;  %s609_s4 = inlined_call_operand.vmem [shape: f32[1,128], index: 4, kind: input, shape index: {}]   ;;  %s610_s5 = inlined_call_operand.hbm [shape: f32[16,128], index: 5, kind: output, shape index: {}]  }
   0x1   :  { %11 = vsyncpa [#allocation7], 0 }
   0x2   :  { %12 = vsyncpa [#allocation5], 0  ;;  %s547_s18 = smov [#allocation6]   ;;  %s548_s20 = smov [#allocation3]  }
   0x3   :  { %s30_s19 = sshll.u32 %s547_s18, 4  ;;  %s18_s21 = sshll.u32 %s548_s20, 4  ;;  %s31_s19 = int_to_ptr.vmem [resolvable:$true] %s30_s19  ;;  %s19_s21 = int_to_ptr.vmem [resolvable:$true] %s18_s21 }
   0x4   :  { %s469_s22 = scalar_lea.vmem %s31_s19, 1024  ;;  %p474_p1 = scmp.lt.s32.totalorder %s31_s19, %s31_s19 }
   0x5   :  { %p470_p0 = scmp.ne.s32.totalorder %s31_s19, %s469_s22  ;;  %p475_p2 = scmp.lt.s32.totalorder %s469_s22, %s469_s22 }
   0x7   :  { %p476_p3 = por %p475_p2, %p474_p1 }
   0x9   :  { %p477_p4 = pnand %p476_p3, %p470_p0 }
   0xb   :  { %480 = shalt.err (!%p477_p4)
}
   0xc   :  { %s549_s23 = smov 64   ;;  %s550_s24 = smov 4  }
   0xd   :  { %36 = dma.hbm_to_vmem [thread:$0]  %s606_s1, 1024, %s31_s19, [#allocation7], %s549_s23, %s549_s23, %s550_s24  }
   0xe   :  { %s489_s27 = scalar_lea.vmem %s19_s21, 128  ;;  %p494_p6 = scmp.lt.s32.totalorder %s19_s21, %s19_s21 }
   0xf   :  { %p490_p5 = scmp.ne.s32.totalorder %s19_s21, %s489_s27  ;;  %p495_p7 = scmp.lt.s32.totalorder %s489_s27, %s489_s27 }
  0x11   :  { %p496_p8 = por %p495_p7, %p494_p6 }
  0x13   :  { %p497_p9 = pnand %p496_p8, %p490_p5 }
  0x15   :  { %500 = shalt.err (!%p497_p9)
}
  0x16   :  { %24 = dma.hbm_to_vmem [thread:$0]  %s605_s0, 128, %s19_s21, [#allocation4], %s549_s23, %s549_s23, %s550_s24  }
  0x17   :  { %s551_s30 = smov [#allocation8]  }
  0x18   :  { %s44_s6 = sshll.u32 %s551_s30, 4  ;;  %s45_s6 = int_to_ptr.vmem [resolvable:$true] %s44_s6 }
  0x19   :  { %s509_s7 = scalar_lea.vmem %s45_s6, 1024  ;;  %p514_p11 = scmp.lt.s32.totalorder %s45_s6, %s45_s6 }
  0x1a   :  { %p510_p10 = scmp.ne.s32.totalorder %s45_s6, %s509_s7  ;;  %p515_p12 = scmp.lt.s32.totalorder %s509_s7, %s509_s7 }
  0x1c   :  { %p516_p13 = por %p515_p12, %p514_p11 }
  0x1e   :  { %p517_p0 = pnand %p516_p13, %p510_p10 }
  0x20   :  { %520 = shalt.err (!%p517_p0)
}
  0x21   :  { %50 = dma.hbm_to_vmem [thread:$0]  %s608_s3, 1024, %s45_s6, [#allocation7], %s549_s23, %s549_s23, %s550_s24  }
  0x22   :  { %541 = dma.done.wait [#allocation4], 128  }
  0x23   :  { %542 = vsyncadd [#allocation4], 4294967168 }
  0x24   :  { %543 = dma.done.wait [#allocation7], 2048  }
  0x25   :  { %544 = vsyncadd [#allocation7], 4294965248  ;;  %v552_v0 = vmov 0.0   ;;  %vm553_vm0 = vmmov 0   ;;  %v440_v1 = vld [vmem:[#allocation6 + $0x38] sm:$0xff]   ;;  %v441_v2 = vld [vmem:[#allocation6 + $0x30] sm:$0xff]  }
  0x26   :  { %390 = vmatprep.subr.bf16.mxu0 %v552_v0  ;;  %406 = vmatprep.mubr.msk.bf16.mxu0 %vm553_vm0, %v552_v0  ;;  %v442_v3 = vld [vmem:[#allocation6 + $0x28] sm:$0xff]   ;;  %v443_v4 = vld [vmem:[#allocation6 + $0x20] sm:$0xff]   ;;  %v444_v5 = vld [vmem:[#allocation6 + $0x18] sm:$0xff]   ;;  %s554_s10 = smov [#allocation9]  }
  0x27   :  { %410 = vmatprep.subr.bf16.mxu1 %v552_v0  ;;  %426 = vmatprep.mubr.msk.bf16.mxu1 %vm553_vm0, %v552_v0  ;;  %v445_v6 = vld [vmem:[#allocation6 + $0x10] sm:$0xff]   ;;  %v446_v7 = vld [vmem:[#allocation6 + $0x8] sm:$0xff]   ;;  %v447_v8 = vld [vmem:[#allocation6] sm:$0xff]   ;;  %s340_s11 = sshll.u32 %s554_s10, 4  ;;  %s341_s11 = int_to_ptr.vmem [resolvable:$true] %s340_s11 }
  0x28   :  { %391 = vmatpush3.bf16.msra.mxu0 %v440_v1  ;;  %v448_v9 = vld [vmem:[#allocation3] sm:$0xff]   ;;  %v450_v11 = vld [vmem:[#allocation8 + $0x30] sm:$0xff]   ;;  %v451_v12 = vld [vmem:[#allocation8 + $0x28] sm:$0xff]   ;;  %s521_s12 = scalar_lea.vmem %s341_s11, 256  ;;  %p526_p2 = scmp.lt.s32.totalorder %s341_s11, %s341_s11 }
  0x29   :  { %392 = vmatprep.subr.bf16.mxu0 %v552_v0  ;;  %v449_v10 = vld [vmem:[#allocation8 + $0x38] sm:$0xff]   ;;  %v452_v13 = vld [vmem:[#allocation8 + $0x20] sm:$0xff]   ;;  %v454_v15 = vld [vmem:[#allocation8 + $0x10] sm:$0xff]   ;;  %p522_p1 = scmp.ne.s32.totalorder %s341_s11, %s521_s12  ;;  %p527_p3 = scmp.lt.s32.totalorder %s521_s12, %s521_s12 }
  0x2a   :  { %411 = vmatpush3.bf16.msra.mxu1 %v449_v10  ;;  %v453_v14 = vld [vmem:[#allocation8 + $0x18] sm:$0xff]   ;;  %v455_v16 = vld [vmem:[#allocation8 + $0x8] sm:$0xff]   ;;  %v456_v17 = vld [vmem:[#allocation8] sm:$0xff]  }
  0x2b   :  { %412 = vmatprep.subr.bf16.mxu1 %v552_v0  ;;  %v353_v18 = vld [vmem:[%s607_s2] ss:$0 sm:$0xff]  ;;  %p528_p4 = por %p527_p3, %p526_p2 }
  0x2c   :  { %393 = vmatpush3.bf16.msra.mxu0 %v441_v2  ;;  %v371_v44 = vld [vmem:[%s609_s4] ss:$0 sm:$0xff] }
  0x2d   :  { %394 = vmatprep.subr.bf16.mxu0 %v552_v0  ;;  %p529_p5 = pnand %p528_p4, %p522_p1 }
  0x2e   :  { %413 = vmatpush3.bf16.msra.mxu1 %v450_v11 }
  0x2f   :  { %414 = vmatprep.subr.bf16.mxu1 %v552_v0 }
  0x30   :  { %395 = vmatpush3.bf16.msra.mxu0 %v442_v3 }
  0x31   :  { %396 = vmatprep.subr.bf16.mxu0 %v552_v0 }
  0x32   :  { %415 = vmatpush3.bf16.msra.mxu1 %v451_v12 }
  0x33   :  { %416 = vmatprep.subr.bf16.mxu1 %v552_v0 }
  0x34   :  { %397 = vmatpush3.bf16.msra.mxu0 %v443_v4 }
  0x35   :  { %398 = vmatprep.subr.bf16.mxu0 %v552_v0 }
  0x36   :  { %417 = vmatpush3.bf16.msra.mxu1 %v452_v13 }
  0x37   :  { %418 = vmatprep.subr.bf16.mxu1 %v552_v0 }
  0x38   :  { %399 = vmatpush3.bf16.msra.mxu0 %v444_v5 }
  0x39   :  { %400 = vmatprep.subr.bf16.mxu0 %v552_v0 }
  0x3a   :  { %419 = vmatpush3.bf16.msra.mxu1 %v453_v14 }
  0x3b   :  { %420 = vmatprep.subr.bf16.mxu1 %v552_v0 }
  0x3c   :  { %401 = vmatpush3.bf16.msra.mxu0 %v445_v6 }
  0x3d   :  { %402 = vmatprep.subr.bf16.mxu0 %v552_v0 }
  0x3e   :  { %421 = vmatpush3.bf16.msra.mxu1 %v454_v15 }
  0x3f   :  { %422 = vmatprep.subr.bf16.mxu1 %v552_v0 }
  0x40   :  { %403 = vmatpush3.bf16.msra.mxu0 %v446_v7 }
  0x41   :  { %404 = vmatprep.subr.bf16.mxu0 %v552_v0 }
  0x42   :  { %423 = vmatpush3.bf16.msra.mxu1 %v455_v16 }
  0x43   :  { %424 = vmatprep.subr.bf16.mxu1 %v552_v0 }
  0x44   :  { %405 = vmatpush3.bf16.msra.mxu0 %v447_v8 }
  0x46   :  { %425 = vmatpush3.bf16.msra.mxu1 %v456_v17 }
  0x47   :  { %407 = vmatmul.mubr.bf16.vlgmr.msra.gmra.mxu0 %v448_v9 }
 0x107   :  { %v182_v19 = vpop.f32.mrf.mxu0 }
 0x108   :  { %v183_v20 = vadd.f32 %v353_v18, %v182_v19 }
 0x109   :  { %v408_v21 = vpop.f32.mrf.mxu0 }
 0x10a   :  { %v191_v22 = vmul.f32 0.044715, %v183_v20  ;;  %v189_v38 = vmul.f32 0.5, %v183_v20 }
 0x10b   :  { %v185_v23 = vpop.f32.mrf.mxu0 }
 0x10c   :  { %v193_v24 = vmul.f32 %v191_v22, %v183_v20  ;;  %v186_v25 = vadd.f32 %v353_v18, %v185_v23 }
 0x10d   :  { %v409_v26 = vpop.f32.mrf.mxu0 }
 0x10e   :  { %v195_v27 = vmul.f32 %v193_v24, %v183_v20  ;;  %v192_v28 = vmul.f32 0.044715, %v186_v25  ;;  %v190_v39 = vmul.f32 0.5, %v186_v25 }
 0x110   :  { %v194_v29 = vmul.f32 %v192_v28, %v186_v25  ;;  %v197_v30 = vadd.f32 %v195_v27, %v183_v20 }
 0x112   :  { %v196_v31 = vmul.f32 %v194_v29, %v186_v25  ;;  %v199_v32 = vmul.f32 0.7978846, %v197_v30 }
 0x114   :  { %v198_v33 = vadd.f32 %v196_v31, %v186_v25  ;;  %457 = vtanh.f32 %v199_v32 }
 0x116   :  { %v200_v34 = vmul.f32 0.7978846, %v198_v33 }
 0x118   :  { %459 = vtanh.f32 %v200_v34 }
 0x121   :  { %v458_v35 = vpop.eup %457 }
 0x122   :  { %v203_v36 = vadd.f32 1.0, %v458_v35 }
 0x124   :  { %v205_v41 = vmul.f32 %v203_v36, %v189_v38 }
 0x125   :  { %v460_v37 = vpop.eup %459 }
 0x126   :  { %v204_v40 = vadd.f32 1.0, %v460_v37 }
 0x128   :  { %v206_v42 = vmul.f32 %v204_v40, %v190_v39 }
 0x12a   :  { %v209_v43 = vpack.c.bf16 %v206_v42, %v205_v41 }
 0x12c   :  { %427 = vmatmul.mubr.bf16.vlgmr.msra.gmra.mxu1 %v209_v43 }
 0x1ec   :  { %v308_v45 = vpop.f32.mrf.mxu1 }
 0x1ed   :  { %v331_v46 = vadd.f32 %v371_v44, %v308_v45 }
 0x1ee   :  { %v428_v47 = vpop.f32.mrf.mxu1 }
 0x1ef   :  { %333 = vst [vmem:[#allocation9] sm:$0xff] %v331_v46 }
 0x1f0   :  { %v311_v48 = vpop.f32.mrf.mxu1 }
 0x1f1   :  { %v332_v49 = vadd.f32 %v371_v44, %v311_v48 }
 0x1f2   :  { %v429_v50 = vpop.f32.mrf.mxu1 }
 0x1f3   :  { %334 = vst [vmem:[#allocation9 + $0x8] sm:$0xff] %v332_v49 }
 0x1f4   :  { %532 = shalt.err (!%p529_p5)
}
 0x1f5   :  { %s555_s13 = smov 128   ;;  %s556_s4 = smov 8  }
 0x1f6   :  { %346 = dma.vmem_to_hbm [thread:$0]  %s341_s11, 256, %s610_s5, [#allocation5], %s555_s13, %s555_s13, %s556_s4  }
 0x1f7   :  { %545 = dma.done.wait [#allocation5], 256  }
 0x1f8   :  { %546 = vsyncadd [#allocation5], 4294967040 }
 0x1f9   :  { %350 = vsyncpa [#allocation4], 1 }
 0x1fa   :  { %351 = vsyncpa [#allocation7], 1 }
 0x1fb   :  { %352 = vsyncpa [#allocation5], 1 }

</bundles_post_ra>
